<compile_context>
chip_gen: v7x
topology: tpu7x:2x2x1
jax: 0.10.0
libtpu: 0.0.40
codegen_flags: <defaults>
</compile_context>

<pallas_src>
import jax
import jax.numpy as jnp
from jax.experimental import pallas as pl
from jax.experimental.pallas import tpu as pltpu


def _centered_fft_matrix(n):
    """Matrix M with  M @ v == fftshift(fft(ifftshift(v), norm='ortho')).

    The centered orthonormal inverse is exactly conj(M) (M is unitary and symmetric),
    so no separate inverse matrices are needed.
    """
    eye = jnp.eye(n, dtype=jnp.complex64)
    shifted = jnp.fft.ifftshift(eye, axes=0)
    f = jnp.fft.fft(shifted, axis=0, norm="ortho")
    return jnp.fft.fftshift(f, axes=0)


def _cmatmul(ar, ai, br, bi, *, conj_a=False, conj_b=False):
    """Complex matmul via 3 real MXU matmuls (Gauss trick), optional conjugation.

      A = ar + i*ai (or ar - i*ai if conj_a), B = br + i*bi (or br - i*bi if conj_b).
    """
    t1 = jnp.dot(ar, br, preferred_element_type=jnp.float32)
    t2 = jnp.dot(ai, bi, preferred_element_type=jnp.float32)
    if conj_a:
        t3 = jnp.dot(ar - ai, br + bi, preferred_element_type=jnp.float32)
        return t1 + t2, t3 - t1 + t2
    if conj_b:
        t3 = jnp.dot(ar + ai, br - bi, preferred_element_type=jnp.float32)
        return t1 + t2, t3 - t1 + t2
    t3 = jnp.dot(ar + ai, br + bi, preferred_element_type=jnp.float32)
    return t1 - t2, t3 - t1 - t2


def _dc_kernel(mask_ref, xrec_ref, xk_ref,
               fh_r_ref, fh_i_ref, fwt_r_ref, fwt_i_ref,
               out_ref):
    fh_r, fh_i = fh_r_ref[...], fh_i_ref[...]
    fwt_r, fwt_i = fwt_r_ref[...], fwt_i_ref[...]

    xr = xrec_ref[0, 0]          # (H, W) real part
    xi = xrec_ref[0, 1]          # (H, W) imag part

    # ---- x_rec -> k-space:  K = Fh @ X @ FwT  (centered orthonormal fft2) ----
    tr, ti = _cmatmul(fh_r, fh_i, xr, xi)
    kr, ki = _cmatmul(tr, ti, fwt_r, fwt_i)

    # ---- data consistency: (1 - mask) * K + xk_under  (mask broadcast over channels) ----
    one_minus_m = 1.0 - mask_ref[0, 0]
    kr = one_minus_m * kr + xk_ref[0, 0]
    ki = one_minus_m * ki + xk_ref[0, 1]

    # ---- back to image domain:  Out = conj(Fh) @ K @ conj(FwT)  (centered ifft2) ----
    tr, ti = _cmatmul(fh_r, fh_i, kr, ki, conj_a=True)
    orr, ori = _cmatmul(tr, ti, fwt_r, fwt_i, conj_b=True)

    out_ref[0, 0] = orr
    out_ref[0, 1] = ori


def dc_layer(mask, x_rec, xk_under):
    """Pallas implementation of DC_layer.forward. Inputs/outputs in NCHW float32."""
    n, c, h, w = x_rec.shape
    assert c == 2 and mask.shape == (n, 1, h, w) and xk_under.shape == (n, 2, h, w)

    # Forward centered DFT matrices only (inverse = conjugate, applied in-kernel).
    fh = _centered_fft_matrix(h)        # rows   (axis -2):  Fh @ X
    fw_t = _centered_fft_matrix(w).T    # cols   (axis -1):  X @ Fw.T
    mats = [fh.real, fh.imag, fw_t.real, fw_t.imag]
    mats = [m.astype(jnp.float32) for m in mats]

    img_spec = pl.BlockSpec((1, 2, h, w), lambda i: (i, 0, 0, 0))
    mask_spec = pl.BlockSpec((1, 1, h, w), lambda i: (i, 0, 0, 0))
    hh_spec = pl.BlockSpec((h, h), lambda i: (0, 0))   # constant index_map -> resident
    ww_spec = pl.BlockSpec((w, w), lambda i: (0, 0))

    # Advisory cost estimate: 12 real matmuls / image after the Gauss trick.
    flops = int(n) * (12 * h * w * (h + w) + 6 * h * w)
    bytes_accessed = 4 * (int(n) * 7 * h * w + 2 * (h * h + w * w))
    cost = pl.CostEstimate(flops=flops, transcendentals=0,
                           bytes_accessed=bytes_accessed)

    # Raise the scoped VMEM limit only when the working set actually needs it
    # (image tiles double-buffered + resident DFT matrices + live fp32 temporaries).
    needed = (4 * 7 * h * w * 2            # mask/x_rec/xk/out tiles, double-buffered
              + 4 * 2 * (h * h + w * w) * 2  # 4 DFT matrices (worst-case 2 buffers)
              + 4 * 12 * h * w             # in-kernel intermediates
              + (4 << 20))                 # headroom
    vmem_limit = None if needed <= (32 << 20) else min(needed, 100 << 20)

    return pl.pallas_call(
        _dc_kernel,
        out_shape=jax.ShapeDtypeStruct((n, 2, h, w), jnp.float32),
        grid_spec=pltpu.PrefetchScalarGridSpec(
            num_scalar_prefetch=0,
            grid=(n,),
            in_specs=[mask_spec, img_spec, img_spec,
                      hh_spec, hh_spec, ww_spec, ww_spec],
            out_specs=img_spec,
        ),
        compiler_params=pltpu.CompilerParams(
            dimension_semantics=("parallel",),     # v7x: batch shards across both TCs
            vmem_limit_bytes=vmem_limit),
        cost_estimate=cost,
    )(mask.astype(jnp.float32), x_rec.astype(jnp.float32),
      xk_under.astype(jnp.float32), *mats)


def _reference(mask, x_rec, xk_under):
    """Pure-JAX reference mirroring the PyTorch forward exactly."""
    xc = x_rec[:, 0] + 1j * x_rec[:, 1]
    xf = jnp.fft.fftshift(
        jnp.fft.fft2(jnp.fft.ifftshift(xc, axes=(-2, -1)), norm="ortho"),
        axes=(-2, -1))
    xf2r = jnp.stack([xf.real, xf.imag], axis=1)
    masks = jnp.concatenate([mask, mask], axis=1)
    out = (1.0 - masks) * xf2r + xk_under
    oc = out[:, 0] + 1j * out[:, 1]
    oi = jnp.fft.fftshift(
        jnp.fft.ifft2(jnp.fft.ifftshift(oc, axes=(-2, -1)), norm="ortho"),
        axes=(-2, -1))
    return jnp.stack([oi.real, oi.imag], axis=1)


if __name__ == "__main__":
    key = jax.random.PRNGKey(0)
    k1, k2, k3 = jax.random.split(key, 3)

    N, H, W = 2, 16, 16
    mask = jax.random.bernoulli(k1, p=0.4, shape=(N, 1, H, W)).astype(jnp.float32)
    x_rec = jax.random.normal(k2, (N, 2, H, W), dtype=jnp.float32)
    xk_under = jax.random.normal(k3, (N, 2, H, W), dtype=jnp.float32)

    out = dc_layer(mask, x_rec, xk_under)
    out = jax.block_until_ready(out)

    ref = _reference(mask, x_rec, xk_under)
    assert out.shape == (N, 2, H, W)
    assert jnp.allclose(out, ref, atol=1e-4, rtol=1e-4), "mismatch vs reference"

    print("KERNEL_OK")
</pallas_src>

<mosaic_0001>
module attributes {stable_mosaic.version = 11 : i64} {
  func.func @_dc_kernel(%arg0: i32, %arg1: memref<1x1x16x16xf32, #tpu.memory_space<vmem>>, %arg2: memref<1x2x16x16xf32, #tpu.memory_space<vmem>>, %arg3: memref<1x2x16x16xf32, #tpu.memory_space<vmem>>, %arg4: memref<16x16xf32, #tpu.memory_space<vmem>>, %arg5: memref<16x16xf32, #tpu.memory_space<vmem>>, %arg6: memref<16x16xf32, #tpu.memory_space<vmem>>, %arg7: memref<16x16xf32, #tpu.memory_space<vmem>>, %arg8: memref<1x2x16x16xf32, #tpu.memory_space<vmem>>) attributes {dimension_semantics = [#tpu.dimension_semantics<parallel>], iteration_bounds = array<i64: 2>, scalar_prefetch = 0 : i64, scratch_operands = 0 : i64, tpu.core_type = #tpu.core_type<tc>, window_params = [{transform_indices = @transform_0, window_bounds = array<i64: 1, 1, 16, 16>}, {transform_indices = @transform_1, window_bounds = array<i64: 1, 2, 16, 16>}, {transform_indices = @transform_2, window_bounds = array<i64: 1, 2, 16, 16>}, {pipeline_mode = #tpu.pipeline_mode<synchronous>, transform_indices = @transform_3, window_bounds = array<i64: 16, 16>}, {pipeline_mode = #tpu.pipeline_mode<synchronous>, transform_indices = @transform_4, window_bounds = array<i64: 16, 16>}, {pipeline_mode = #tpu.pipeline_mode<synchronous>, transform_indices = @transform_5, window_bounds = array<i64: 16, 16>}, {pipeline_mode = #tpu.pipeline_mode<synchronous>, transform_indices = @transform_6, window_bounds = array<i64: 16, 16>}, {transform_indices = @transform_7, window_bounds = array<i64: 1, 2, 16, 16>}]} {
    %c0 = arith.constant 0 : index
    %c0_0 = arith.constant 0 : index
    %0 = vector.load %arg4[%c0, %c0_0] : memref<16x16xf32, #tpu.memory_space<vmem>>, vector<16x16xf32>
    %c0_1 = arith.constant 0 : index
    %c0_2 = arith.constant 0 : index
    %1 = vector.load %arg5[%c0_1, %c0_2] : memref<16x16xf32, #tpu.memory_space<vmem>>, vector<16x16xf32>
    %c0_3 = arith.constant 0 : index
    %c0_4 = arith.constant 0 : index
    %2 = vector.load %arg6[%c0_3, %c0_4] : memref<16x16xf32, #tpu.memory_space<vmem>>, vector<16x16xf32>
    %c0_5 = arith.constant 0 : index
    %c0_6 = arith.constant 0 : index
    %3 = vector.load %arg7[%c0_5, %c0_6] : memref<16x16xf32, #tpu.memory_space<vmem>>, vector<16x16xf32>
    %c0_7 = arith.constant 0 : index
    %c0_8 = arith.constant 0 : index
    %c0_9 = arith.constant 0 : index
    %c0_10 = arith.constant 0 : index
    %4 = vector.load %arg2[%c0_7, %c0_8, %c0_9, %c0_10] : memref<1x2x16x16xf32, #tpu.memory_space<vmem>>, vector<1x1x16x16xf32>
    %5 = vector.shape_cast %4 : vector<1x1x16x16xf32> to vector<16x16xf32>
    %c0_11 = arith.constant 0 : index
    %c1 = arith.constant 1 : index
    %c0_12 = arith.constant 0 : index
    %c0_13 = arith.constant 0 : index
    %6 = vector.load %arg2[%c0_11, %c1, %c0_12, %c0_13] : memref<1x2x16x16xf32, #tpu.memory_space<vmem>>, vector<1x1x16x16xf32>
    %7 = vector.shape_cast %6 : vector<1x1x16x16xf32> to vector<16x16xf32>
    %cst = arith.constant dense<0.000000e+00> : vector<16x16xf32>
    %8 = tpu.matmul %0, %5, %cst {dimension_numbers = #tpu.dot_dimension_numbers<[1], [0], [0], [1], [0, 0, 1, 1], [], []>} : vector<16x16xf32>, vector<16x16xf32>, vector<16x16xf32> -> vector<16x16xf32>
    %cst_14 = arith.constant dense<0.000000e+00> : vector<16x16xf32>
    %9 = tpu.matmul %1, %7, %cst_14 {dimension_numbers = #tpu.dot_dimension_numbers<[1], [0], [0], [1], [0, 0, 1, 1], [], []>} : vector<16x16xf32>, vector<16x16xf32>, vector<16x16xf32> -> vector<16x16xf32>
    %10 = arith.addf %0, %1 : vector<16x16xf32>
    %11 = arith.addf %5, %7 : vector<16x16xf32>
    %cst_15 = arith.constant dense<0.000000e+00> : vector<16x16xf32>
    %12 = tpu.matmul %10, %11, %cst_15 {dimension_numbers = #tpu.dot_dimension_numbers<[1], [0], [0], [1], [0, 0, 1, 1], [], []>} : vector<16x16xf32>, vector<16x16xf32>, vector<16x16xf32> -> vector<16x16xf32>
    %13 = arith.subf %8, %9 : vector<16x16xf32>
    %14 = arith.subf %12, %8 : vector<16x16xf32>
    %15 = arith.subf %14, %9 : vector<16x16xf32>
    %cst_16 = arith.constant dense<0.000000e+00> : vector<16x16xf32>
    %16 = tpu.matmul %13, %2, %cst_16 {dimension_numbers = #tpu.dot_dimension_numbers<[1], [0], [0], [1], [0, 0, 1, 1], [], []>} : vector<16x16xf32>, vector<16x16xf32>, vector<16x16xf32> -> vector<16x16xf32>
    %cst_17 = arith.constant dense<0.000000e+00> : vector<16x16xf32>
    %17 = tpu.matmul %15, %3, %cst_17 {dimension_numbers = #tpu.dot_dimension_numbers<[1], [0], [0], [1], [0, 0, 1, 1], [], []>} : vector<16x16xf32>, vector<16x16xf32>, vector<16x16xf32> -> vector<16x16xf32>
    %18 = arith.addf %13, %15 : vector<16x16xf32>
    %19 = arith.addf %2, %3 : vector<16x16xf32>
    %cst_18 = arith.constant dense<0.000000e+00> : vector<16x16xf32>
    %20 = tpu.matmul %18, %19, %cst_18 {dimension_numbers = #tpu.dot_dimension_numbers<[1], [0], [0], [1], [0, 0, 1, 1], [], []>} : vector<16x16xf32>, vector<16x16xf32>, vector<16x16xf32> -> vector<16x16xf32>
    %21 = arith.subf %16, %17 : vector<16x16xf32>
    %22 = arith.subf %20, %16 : vector<16x16xf32>
    %23 = arith.subf %22, %17 : vector<16x16xf32>
    %c0_19 = arith.constant 0 : index
    %c0_20 = arith.constant 0 : index
    %c0_21 = arith.constant 0 : index
    %c0_22 = arith.constant 0 : index
    %24 = vector.load %arg1[%c0_19, %c0_20, %c0_21, %c0_22] : memref<1x1x16x16xf32, #tpu.memory_space<vmem>>, vector<1x1x16x16xf32>
    %25 = vector.shape_cast %24 : vector<1x1x16x16xf32> to vector<16x16xf32>
    %cst_23 = arith.constant 1.000000e+00 : f32
    %26 = vector.broadcast %cst_23 : f32 to vector<16x16xf32>
    %27 = arith.subf %26, %25 : vector<16x16xf32>
    %28 = arith.mulf %27, %21 : vector<16x16xf32>
    %c0_24 = arith.constant 0 : index
    %c0_25 = arith.constant 0 : index
    %c0_26 = arith.constant 0 : index
    %c0_27 = arith.constant 0 : index
    %29 = vector.load %arg3[%c0_24, %c0_25, %c0_26, %c0_27] : memref<1x2x16x16xf32, #tpu.memory_space<vmem>>, vector<1x1x16x16xf32>
    %30 = vector.shape_cast %29 : vector<1x1x16x16xf32> to vector<16x16xf32>
    %31 = arith.addf %28, %30 : vector<16x16xf32>
    %32 = arith.mulf %27, %23 : vector<16x16xf32>
    %c0_28 = arith.constant 0 : index
    %c1_29 = arith.constant 1 : index
    %c0_30 = arith.constant 0 : index
    %c0_31 = arith.constant 0 : index
    %33 = vector.load %arg3[%c0_28, %c1_29, %c0_30, %c0_31] : memref<1x2x16x16xf32, #tpu.memory_space<vmem>>, vector<1x1x16x16xf32>
    %34 = vector.shape_cast %33 : vector<1x1x16x16xf32> to vector<16x16xf32>
    %35 = arith.addf %32, %34 : vector<16x16xf32>
    %cst_32 = arith.constant dense<0.000000e+00> : vector<16x16xf32>
    %36 = tpu.matmul %0, %31, %cst_32 {dimension_numbers = #tpu.dot_dimension_numbers<[1], [0], [0], [1], [0, 0, 1, 1], [], []>} : vector<16x16xf32>, vector<16x16xf32>, vector<16x16xf32> -> vector<16x16xf32>
    %cst_33 = arith.constant dense<0.000000e+00> : vector<16x16xf32>
    %37 = tpu.matmul %1, %35, %cst_33 {dimension_numbers = #tpu.dot_dimension_numbers<[1], [0], [0], [1], [0, 0, 1, 1], [], []>} : vector<16x16xf32>, vector<16x16xf32>, vector<16x16xf32> -> vector<16x16xf32>
    %38 = arith.subf %0, %1 : vector<16x16xf32>
    %39 = arith.addf %31, %35 : vector<16x16xf32>
    %cst_34 = arith.constant dense<0.000000e+00> : vector<16x16xf32>
    %40 = tpu.matmul %38, %39, %cst_34 {dimension_numbers = #tpu.dot_dimension_numbers<[1], [0], [0], [1], [0, 0, 1, 1], [], []>} : vector<16x16xf32>, vector<16x16xf32>, vector<16x16xf32> -> vector<16x16xf32>
    %41 = arith.addf %36, %37 : vector<16x16xf32>
    %42 = arith.subf %40, %36 : vector<16x16xf32>
    %43 = arith.addf %42, %37 : vector<16x16xf32>
    %cst_35 = arith.constant dense<0.000000e+00> : vector<16x16xf32>
    %44 = tpu.matmul %41, %2, %cst_35 {dimension_numbers = #tpu.dot_dimension_numbers<[1], [0], [0], [1], [0, 0, 1, 1], [], []>} : vector<16x16xf32>, vector<16x16xf32>, vector<16x16xf32> -> vector<16x16xf32>
    %cst_36 = arith.constant dense<0.000000e+00> : vector<16x16xf32>
    %45 = tpu.matmul %43, %3, %cst_36 {dimension_numbers = #tpu.dot_dimension_numbers<[1], [0], [0], [1], [0, 0, 1, 1], [], []>} : vector<16x16xf32>, vector<16x16xf32>, vector<16x16xf32> -> vector<16x16xf32>
    %46 = arith.addf %41, %43 : vector<16x16xf32>
    %47 = arith.subf %2, %3 : vector<16x16xf32>
    %cst_37 = arith.constant dense<0.000000e+00> : vector<16x16xf32>
    %48 = tpu.matmul %46, %47, %cst_37 {dimension_numbers = #tpu.dot_dimension_numbers<[1], [0], [0], [1], [0, 0, 1, 1], [], []>} : vector<16x16xf32>, vector<16x16xf32>, vector<16x16xf32> -> vector<16x16xf32>
    %49 = arith.addf %44, %45 : vector<16x16xf32>
    %50 = arith.subf %48, %44 : vector<16x16xf32>
    %51 = arith.addf %50, %45 : vector<16x16xf32>
    %c0_38 = arith.constant 0 : index
    %c0_39 = arith.constant 0 : index
    %c0_40 = arith.constant 0 : index
    %c0_41 = arith.constant 0 : index
    %52 = vector.load %arg8[%c0_38, %c0_39, %c0_40, %c0_41] : memref<1x2x16x16xf32, #tpu.memory_space<vmem>>, vector<1x1x16x16xf32>
    %53 = vector.shape_cast %52 : vector<1x1x16x16xf32> to vector<16x16xf32>
    %54 = vector.shape_cast %49 : vector<16x16xf32> to vector<1x1x16x16xf32>
    tpu.vector_store %arg8[%c0_38, %c0_39, %c0_40, %c0_41], %54 {strides = array<i32>} : memref<1x2x16x16xf32, #tpu.memory_space<vmem>>, vector<1x1x16x16xf32>,
    %c0_42 = arith.constant 0 : index
    %c1_43 = arith.constant 1 : index
    %c0_44 = arith.constant 0 : index
    %c0_45 = arith.constant 0 : index
    %55 = vector.load %arg8[%c0_42, %c1_43, %c0_44, %c0_45] : memref<1x2x16x16xf32, #tpu.memory_space<vmem>>, vector<1x1x16x16xf32>
    %56 = vector.shape_cast %55 : vector<1x1x16x16xf32> to vector<16x16xf32>
    %57 = vector.shape_cast %51 : vector<16x16xf32> to vector<1x1x16x16xf32>
    tpu.vector_store %arg8[%c0_42, %c1_43, %c0_44, %c0_45], %57 {strides = array<i32>} : memref<1x2x16x16xf32, #tpu.memory_space<vmem>>, vector<1x1x16x16xf32>,
    return
  }
  func.func @transform_0(%arg0: i32) -> (i32, i32, i32, i32) {
    %c0_i32 = arith.constant 0 : i32
    %c0_i32_0 = arith.constant 0 : i32
    %c0_i32_1 = arith.constant 0 : i32
    %c0_i32_2 = arith.constant 0 : i32
    return %arg0, %c0_i32, %c0_i32_0, %c0_i32_1 : i32, i32, i32, i32
  }
  func.func @transform_1(%arg0: i32) -> (i32, i32, i32, i32) {
    %c0_i32 = arith.constant 0 : i32
    %c0_i32_0 = arith.constant 0 : i32
    %c0_i32_1 = arith.constant 0 : i32
    %c0_i32_2 = arith.constant 0 : i32
    return %arg0, %c0_i32, %c0_i32_0, %c0_i32_1 : i32, i32, i32, i32
  }
  func.func @transform_2(%arg0: i32) -> (i32, i32, i32, i32) {
    %c0_i32 = arith.constant 0 : i32
    %c0_i32_0 = arith.constant 0 : i32
    %c0_i32_1 = arith.constant 0 : i32
    %c0_i32_2 = arith.constant 0 : i32
    return %arg0, %c0_i32, %c0_i32_0, %c0_i32_1 : i32, i32, i32, i32
  }
  func.func @transform_3(%arg0: i32) -> (i32, i32) {
    %c0_i32 = arith.constant 0 : i32
    %c0_i32_0 = arith.constant 0 : i32
    %c0_i32_1 = arith.constant 0 : i32
    return %c0_i32, %c0_i32_0 : i32, i32
  }
  func.func @transform_4(%arg0: i32) -> (i32, i32) {
    %c0_i32 = arith.constant 0 : i32
    %c0_i32_0 = arith.constant 0 : i32
    %c0_i32_1 = arith.constant 0 : i32
    return %c0_i32, %c0_i32_0 : i32, i32
  }
  func.func @transform_5(%arg0: i32) -> (i32, i32) {
    %c0_i32 = arith.constant 0 : i32
    %c0_i32_0 = arith.constant 0 : i32
    %c0_i32_1 = arith.constant 0 : i32
    return %c0_i32, %c0_i32_0 : i32, i32
  }
  func.func @transform_6(%arg0: i32) -> (i32, i32) {
    %c0_i32 = arith.constant 0 : i32
    %c0_i32_0 = arith.constant 0 : i32
    %c0_i32_1 = arith.constant 0 : i32
    return %c0_i32, %c0_i32_0 : i32, i32
  }
  func.func @transform_7(%arg0: i32) -> (i32, i32, i32, i32) {
    %c0_i32 = arith.constant 0 : i32
    %c0_i32_0 = arith.constant 0 : i32
    %c0_i32_1 = arith.constant 0 : i32
    %c0_i32_2 = arith.constant 0 : i32
    return %arg0, %c0_i32, %c0_i32_0, %c0_i32_1 : i32, i32, i32, i32
  }
}

</mosaic_0001>

<bundles_post_ra>
// kernel: tpu_custom_call.1
= control target key start
LH: loop header
LB: loop body
LE: loop exit
PB: predicated region body
PF: predicated region fallthrough
CT: control target
= control target key end

     0   :  { %s2709_s0 = inlined_call_operand.hbm [shape: f32[2,1,16,16], index: 0, kind: input, shape index: {}]   ;;  %s2710_s1 = inlined_call_operand.hbm [shape: f32[2,2,16,16], index: 1, kind: input, shape index: {}]   ;;  %s2711_s2 = inlined_call_operand.hbm [shape: f32[2,2,16,16], index: 2, kind: input, shape index: {}]   ;;  %s2712_s3 = inlined_call_operand.hbm [shape: f32[16,16], index: 3, kind: input, shape index: {}]   ;;  %s2713_s4 = inlined_call_operand.hbm [shape: f32[16,16], index: 4, kind: input, shape index: {}]   ;;  %s2714_s5 = inlined_call_operand.vmem [shape: f32[16,16], index: 5, kind: input, shape index: {}]   ;;  %s2715_s6 = inlined_call_operand.hbm [shape: f32[16,16], index: 6, kind: input, shape index: {}]   ;;  %s2716_s7 = inlined_call_operand.hbm [shape: f32[2,2,16,16], index: 7, kind: output, shape index: {}]  }
   0x1   :  { %2746 = sst [smem:[#allocation26_spill]] %s2710_s1 }
   0x2   :  { %2747 = sst [smem:[#allocation27_spill]] %s2712_s3 }
   0x3   :  { %2748 = sst [smem:[#allocation28_spill]] %s2714_s5 }
   0x4   :  { %2749 = sst [smem:[#allocation29_spill]] %s2716_s7 }
   0x5   :  { %12 = vsyncpa [#allocation3], 0 }
   0x6   :  { %14 = vsyncpa [#allocation3 + $0x1], 0 }
   0x7   :  { %15 = vsyncpa [#allocation6], 0 }
   0x8   :  { %17 = vsyncpa [#allocation6 + $0x1], 0 }
   0x9   :  { %18 = vsyncpa [#allocation9], 0 }
   0xa   :  { %19 = vsyncpa [#allocation12], 0 }
   0xb   :  { %20 = vsyncpa [#allocation4], 0 }
   0xc   :  { %22 = vsyncpa [#allocation4 + $0x1], 0  ;;  %s2251_s24 = smov 0   ;;  %s2253_s25 = smov 0  }
   0xd   :  { %s2255_s26 = smov 0   ;;  %s2257_s27 = smov 0  }
   0xe LB: > { %2750 = sst [smem:[#allocation19_spill]] %s2186_s24  ;;  %s2272_s28 = sadd.s32 4294967295, %s2198_s27   ;;  %s2198_s27 = sphi %s2257_s27, %s2793_s27   ;;  %s2194_s26 = sphi %s2255_s26, %s2795_s26   ;;  %s2190_s25 = sphi %s2253_s25, %s2797_s25   ;;  %s2186_s24 = sphi %s2251_s24, %s2796_s24  }
   0xf   : > { %2751 = sst [smem:[#allocation20_spill]] %s2194_s26  ;;  %s1613_s29 = sadd.s32 4294967294, %s2198_s27  }
  0x10   : > { %2752 = sst [smem:[#allocation21_spill]] %s2272_s28  ;;  %s2276_s30 = sadd.s32 1, %s2198_s27  }
  0x11   : > { %2753 = sst [smem:[#allocation22_spill]] %s2276_s30  ;;  %s35_s8 = sadd.s32 1, %s2194_s26 }
  0x12   : > { %s32_s9 = ssub.s32 %s2198_s27, %s2276_s30  ;;  %p42_p0 = scmp.ne.s32.totalorder %s2194_s26, %s2190_s25 }
  0x13   : > { %p33_p1 = scmp.eq.s32.totalorder %s32_s9, 0  ;;  %p43_p2 = scmp.eq.s32.totalorder %s2198_s27, 0 }
  0x14   : > { %p48_p3 = scmp.ne.s32.totalorder %s2190_s25, %s2186_s24  ;;  %p2717_p4 = scmp.eq.s32.totalorder %s2272_s28, 0 }
  0x15   : > { %s2288_s10 = scalar_select %p33_p1, %s2194_s26, %s35_s8  }
  0x16   : > { %p2290_p5 = por %p43_p2, %p42_p0  ;;  %p2296_p6 = por %p2717_p4, %p48_p3 }
  0x17   : > { %2754 = sst [smem:[#allocation23_spill]] %s2288_s10  ;;  %p208_p7 = scmp.eq.s32.totalorder %s2272_s28, 1 }
  0x18   : > { %s2755_s11 = scalar_select %p2290_p5, 1, 0 }
  0x19   : > { %s2756_s12 = scalar_select %p2296_p6, 1, 0 }
  0x1a   : > { %p214_p8 = scmp.eq.s32.totalorder %s1613_s29, 1  ;;  %p1614_p9 = scmp.ge.s32.totalorder %s2198_s27, 1 }
  0x1b   : > { %p221_p10 = scmp.lt.s32.totalorder %s2198_s27, 3  ;;  %p2303_p11 = por %p208_p7, %p42_p0 }
  0x1c   : > { %p2307_p12 = por %p214_p8, %p48_p3  ;;  %s2200_s16 = smov [#allocation8]  }
  0x1d   : > { %s2757_s13 = scalar_select %p2303_p11, 1, 0 }
  0x1e   : > { %s2759_s14 = scalar_select %p2307_p12, 1, 0 }
  0x1f   : > { %2758 = sst [smem:[#allocation24_spill]] %s2757_s13  ;;  %p2311_p13 = pnand %p1614_p9, %p221_p10 }
  0x20   : > { %2760 = sst [smem:[#allocation25_spill]] %s2759_s14  ;;  %s233_s17 = sshll.u32 %s2200_s16, 4  ;;  %s234_s17 = int_to_ptr.vmem [resolvable:$true] %s233_s17 }
  0x21   : > { %s2761_s15 = scalar_select %p2311_p13, 1, 0 }
  0x22   : > { %p1875_p1 = pneg %p2311_p13  ;;  %s2326_s19 = sand.u32 1, %s2194_s26  }
  0x23   : > { %s297_s20 = sand.u32 1, %s2198_s27   ;;  %s2763_s3 = sld [smem:[#allocation27_spill]] }
  0x24   : > { %p2319_p2 = pnand %p1875_p1, %p2717_p4 }
  0x26   : > { %s2762_s18 = scalar_select %p2319_p2, 1, 0 }
  0x27   : > { %p2337_p8 = pneg %p2319_p2 }
  0x29   : > { %s1946_s23 = scalar_lea.hbm %s2763_s3, 256 }
  0x2a   : > { %p1947_p7 = scmp.ne.s32.totalorder %s2763_s3, %s1946_s23  ;;  %p1953_p1 = scmp.lt.u32.totalorder %s1946_s23, %s2763_s3 }
  0x2b   : > { %s2764_s9 = scalar_select %p2337_p8, 1, 0 }
  0x2c   : > { %p1949_p9 = pnand %p2337_p8, %p1947_p7 }
  0x2e   : > { %p1950_p10 = pneg %p1949_p9 }
  0x30   : > { %p1955_p0 = pnand %p1953_p1, %p1950_p10 }
  0x32   : > { %1958 = shalt.err (!%p1955_p0)
}
  0x33   : > { %s1959_s21 = scalar_lea.vmem %s234_s17, 256  ;;  %p1967_p11 = scmp.lt.s32.totalorder %s234_s17, %s234_s17 }
  0x34   : > { %p1960_p4 = scmp.ne.s32.totalorder %s234_s17, %s1959_s21  ;;  %p1968_p6 = scmp.lt.s32.totalorder %s1959_s21, %s1959_s21 }
  0x36   : > { %p1962_p3 = pnand %p1960_p4, %p2337_p8  ;;  %p1969_p13 = por %p1968_p6, %p1967_p11 }
  0x38   : > { %p1963_p12 = pneg %p1962_p3 }
  0x3a   : > { %p1970_p5 = pnand %p1969_p13, %p1963_p12 }
  0x3c   : > { %1973 = shalt.err (!%p1970_p5)
}
  0x3d   : > { %s2725_s22 = smov 128   ;;  %s2740_s10 = smov 8  }
  0x3e   : > { %1878 = dma.hbm_to_vmem [thread:$0]  (!%p2319_p2), %s2763_s3, 256, %s234_s17, [#allocation9], %s2725_s22, %s2725_s22, %s2740_s10  }
  0x3f   : > { %p2765_p4 = scmp.ne.s32.totalorder %s2755_s11, 0  ;;  %p2766_p6 = scmp.lt.s32.totalorder %s2198_s27, 2 }
  0x40   : > { %s2727_s16 = sshll.u32 %s2326_s19, 5  ;;  %s2728_s21 = sshll.u32 %s2198_s27, 9 }
  0x41   : > { %p2360_p5 = pnand %p2766_p6, %p2765_p4  ;;  %s2768_s1 = sld [smem:[#allocation26_spill]] }
  0x42   : > { %s301_s11 = scalar_lea.vmem [#allocation5], %s2727_s16  ;;  %s2377_s23 = scalar_lea.sflag [#allocation6], %s297_s20 }
  0x43   : > { %s2767_s8 = scalar_select %p2360_p5, 1, 0 }
  0x44   : > { %s308_s17 = sshll.u32 %s301_s11, 4  ;;  %p2383_p12 = pneg %p2360_p5  ;;  %s2375_s17 = int_to_ptr.vmem [resolvable:$true] %s308_s17 }
  0x46   : > { %s2769_s22 = scalar_select %p2383_p12, 1, 0 }
  0x47   : > { %s2371_s14 = scalar_lea.hbm %s2768_s1, %s2728_s21  ;;  %s1979_s16 = scalar_lea.hbm %s2768_s1, 1024 }
  0x48   : > { %s1974_s29 = scalar_lea.hbm %s2371_s14, 512  ;;  %p1980_p3 = scmp.lt.u32.totalorder %s2371_s14, %s2768_s1 }
  0x49   : > { %p1975_p11 = scmp.ne.s32.totalorder %s2371_s14, %s1974_s29  ;;  %p1981_p7 = scmp.lt.u32.totalorder %s1979_s16, %s1974_s29 }
  0x4a   : > { %p1983_p10 = scmp.lt.u32.totalorder %s1974_s29, %s2371_s14 }
  0x4b   : > { %p1977_p13 = pnand %p2383_p12, %p1975_p11  ;;  %p1982_p9 = por %p1981_p7, %p1980_p3 }
  0x4d   : > { %p1978_p0 = pneg %p1977_p13  ;;  %p1984_p1 = por %p1983_p10, %p1982_p9 }
  0x4f   : > { %p1985_p4 = pnand %p1984_p1, %p1978_p0 }
  0x51   : > { %1988 = shalt.err (!%p1985_p4)
}
  0x52   : > { %s1989_s20 = scalar_lea.vmem %s2375_s17, 512  ;;  %s2203_s26 = smov [#allocation5]  }
  0x53   : > { %p1990_p6 = scmp.ne.s32.totalorder %s2375_s17, %s1989_s20  ;;  %s1994_s30 = sshll.u32 %s2203_s26, 4  ;;  %s1995_s30 = int_to_ptr.vmem [resolvable:$false] %s1994_s30 }
  0x54   : > { %s1996_s21 = scalar_lea.vmem %s1995_s30, 1024  ;;  %p1997_p2 = scmp.lt.s32.totalorder %s2375_s17, %s1995_s30 }
  0x55   : > { %p1992_p11 = pnand %p1990_p6, %p2383_p12  ;;  %p1998_p8 = scmp.lt.s32.totalorder %s1996_s21, %s1989_s20 }
  0x57   : > { %p1993_p13 = pneg %p1992_p11  ;;  %p1999_p3 = por %p1998_p8, %p1997_p2 }
  0x59   : > { %p2000_p7 = pnand %p1999_p3, %p1993_p13 }
  0x5b   : > { %2003 = shalt.err (!%p2000_p7)
}
  0x5c   : > { %s2770_s16 = smov 128   ;;  %s2771_s29 = sshll.u32 %s2198_s27, 9 }
  0x5d   : > { %1891 = dma.hbm_to_vmem [thread:$0]  (!%p2360_p5), %s2371_s14, 512, %s2375_s17, %s2377_s23, %s2770_s16, %s2770_s16, %s2740_s10  }
  0x5e   : > { %s2415_s20 = scalar_lea.hbm %s2711_s2, %s2771_s29  ;;  %s2772_s30 = sshll.u32 %s2326_s19, 5 }
  0x5f   : > { %s2419_s21 = scalar_lea.vmem [#allocation7], %s2772_s30  ;;  %s2204_s3 = smov [#allocation10]  }
  0x60   : > { %s329_s1 = sshll.u32 %s2419_s21, 4  ;;  %s246_s24 = sshll.u32 %s2204_s3, 4  ;;  %s247_s24 = int_to_ptr.vmem [resolvable:$true] %s246_s24  ;;  %s2473_s1 = int_to_ptr.vmem [resolvable:$true] %s329_s1 }
  0x61   : > { %s2205_s7 = smov [#allocation11]   ;;  %s2004_s14 = scalar_lea.hbm %s2713_s4, 256 }
  0x62   : > { %s262_s13 = sshll.u32 %s2205_s7, 4  ;;  %p2005_p2 = scmp.ne.s32.totalorder %s2713_s4, %s2004_s14  ;;  %s263_s13 = int_to_ptr.vmem [resolvable:$true] %s262_s13 }
  0x63   : > { %p2773_p8 = scmp.ne.s32.totalorder %s2764_s9, 0  ;;  %p2011_p10 = scmp.lt.u32.totalorder %s2004_s14, %s2713_s4 }
  0x65   : > { %p2007_p0 = pnand %p2005_p2, %p2773_p8 }
  0x67   : > { %p2008_p9 = pneg %p2007_p0 }
  0x69   : > { %p2013_p1 = pnand %p2011_p10, %p2008_p9 }
  0x6b   : > { %2016 = shalt.err (!%p2013_p1)
}
  0x6c   : > { %s2017_s3 = scalar_lea.vmem %s247_s24, 256  ;;  %p2025_p13 = scmp.lt.s32.totalorder %s247_s24, %s247_s24 }
  0x6d   : > { %p2018_p4 = scmp.ne.s32.totalorder %s247_s24, %s2017_s3  ;;  %p2026_p3 = scmp.lt.s32.totalorder %s2017_s3, %s2017_s3 }
  0x6f   : > { %p2020_p6 = pnand %p2018_p4, %p2773_p8  ;;  %p2027_p7 = por %p2026_p3, %p2025_p13 }
  0x71   : > { %p2021_p11 = pneg %p2020_p6 }
  0x73   : > { %p2028_p5 = pnand %p2027_p7, %p2021_p11 }
  0x75   : > { %2031 = shalt.err (!%p2028_p5)
}
  0x76   : > { %p2774_p2 = scmp.ne.s32.totalorder %s2762_s18, 0  ;;  %s2775_s5 = smov 8  }
  0x77   : > { %s2032_s30 = scalar_lea.hbm %s2715_s6, 256 }
  0x78   : > { %1881 = dma.hbm_to_vmem [thread:$0]  (!%p2774_p2), %s2713_s4, 256, %s247_s24, [#allocation9], %s2770_s16, %s2770_s16, %s2775_s5  }
  0x79   : > { %p2033_p0 = scmp.ne.s32.totalorder %s2715_s6, %s2032_s30  ;;  %p2039_p10 = scmp.lt.u32.totalorder %s2032_s30, %s2715_s6 }
  0x7b   : > { %p2035_p5 = pnand %p2033_p0, %p2773_p8 }
  0x7d   : > { %p2036_p9 = pneg %p2035_p5 }
  0x7f   : > { %p2041_p1 = pnand %p2039_p10, %p2036_p9 }
  0x81   : > { %2044 = shalt.err (!%p2041_p1)
}
  0x82   : > { %s2045_s3 = scalar_lea.vmem %s263_s13, 256  ;;  %p2053_p13 = scmp.lt.s32.totalorder %s263_s13, %s263_s13 }
  0x83   : > { %p2046_p4 = scmp.ne.s32.totalorder %s263_s13, %s2045_s3  ;;  %p2054_p3 = scmp.lt.s32.totalorder %s2045_s3, %s2045_s3 }
  0x85   : > { %p2048_p6 = pnand %p2046_p4, %p2773_p8  ;;  %p2055_p7 = por %p2054_p3, %p2053_p13 }
  0x87   : > { %p2049_p11 = pneg %p2048_p6 }
  0x89   : > { %p2056_p12 = pnand %p2055_p7, %p2049_p11 }
  0x8b   : > { %2059 = shalt.err (!%p2056_p12)
}
  0x8c   : > { %1884 = dma.hbm_to_vmem [thread:$0]  (!%p2774_p2), %s2715_s6, 256, %s263_s13, [#allocation12], %s2770_s16, %s2770_s16, %s2775_s5  }
  0x8d   : > { %s1619_s9 = sshll.u32 %s2326_s19, 4  ;;  %s1671_s28 = sshll.u32 %s2198_s27, 8 }
  0x8e   : > { %s2469_s30 = scalar_lea.hbm %s2709_s0, %s1671_s28  ;;  %s280_s18 = scalar_lea.vmem [#allocation2], %s1619_s9 }
  0x8f   : > { %s287_s14 = sshll.u32 %s280_s18, 4  ;;  %s277_s17 = scalar_lea.sflag [#allocation3], %s2326_s19  ;;  %s2475_s14 = int_to_ptr.vmem [resolvable:$true] %s287_s14 }
  0x90   : > { %s2060_s13 = scalar_lea.hbm %s2469_s30, 256  ;;  %p2776_p8 = scmp.ne.s32.totalorder %s2769_s22, 0 }
  0x91   : > { %p2061_p12 = scmp.ne.s32.totalorder %s2469_s30, %s2060_s13  ;;  %s2065_s21 = scalar_lea.hbm %s2709_s0, 512 }
  0x92   : > { %p2066_p5 = scmp.lt.u32.totalorder %s2469_s30, %s2709_s0  ;;  %p2067_p9 = scmp.lt.u32.totalorder %s2065_s21, %s2060_s13 }
  0x93   : > { %p2063_p2 = pnand %p2061_p12, %p2776_p8  ;;  %p2069_p1 = scmp.lt.u32.totalorder %s2060_s13, %s2469_s30 }
  0x94   : > { %p2068_p10 = por %p2067_p9, %p2066_p5 }
  0x95   : > { %p2064_p0 = pneg %p2063_p2 }
  0x96   : > { %p2070_p4 = por %p2069_p1, %p2068_p10 }
  0x98   : > { %p2071_p6 = pnand %p2070_p4, %p2064_p0 }
  0x9a   : > { %2074 = shalt.err (!%p2071_p6)
}
  0x9b   : > { %s2075_s7 = scalar_lea.vmem %s2475_s14, 256  ;;  %s2206_s9 = smov [#allocation2]  }
  0x9c   : > { %p2076_p11 = scmp.ne.s32.totalorder %s2475_s14, %s2075_s7  ;;  %s2080_s28 = sshll.u32 %s2206_s9, 4  ;;  %s2081_s28 = int_to_ptr.vmem [resolvable:$false] %s2080_s28 }
  0x9d   : > { %s2082_s10 = scalar_lea.vmem %s2081_s28, 512  ;;  %p2083_p7 = scmp.lt.s32.totalorder %s2475_s14, %s2081_s28 }
  0x9e   : > { %p2078_p13 = pnand %p2076_p11, %p2776_p8  ;;  %p2084_p12 = scmp.lt.s32.totalorder %s2082_s10, %s2075_s7 }
  0xa0   : > { %p2079_p3 = pneg %p2078_p13  ;;  %p2085_p2 = por %p2084_p12, %p2083_p7 }
  0xa2   : > { %p2086_p5 = pnand %p2085_p2, %p2079_p3 }
  0xa4   : > { %2089 = shalt.err (!%p2086_p5)
}
  0xa5   : > { %p2777_p0 = scmp.ne.s32.totalorder %s2767_s8, 0  ;;  %s2090_s26 = scalar_lea.hbm %s2415_s20, 512 }
  0xa6   : > { %p2091_p9 = scmp.ne.s32.totalorder %s2415_s20, %s2090_s26  ;;  %s2095_s29 = scalar_lea.hbm %s2711_s2, 1024 }
  0xa7   : > { %1888 = dma.hbm_to_vmem [thread:$0]  (!%p2777_p0), %s2469_s30, 256, %s2475_s14, %s277_s17, %s2770_s16, %s2770_s16, %s2775_s5  }
  0xa8   : > { %p2093_p10 = pnand %p2091_p9, %p2776_p8  ;;  %p2096_p4 = scmp.lt.u32.totalorder %s2415_s20, %s2711_s2 }
  0xa9   : > { %p2097_p6 = scmp.lt.u32.totalorder %s2095_s29, %s2090_s26  ;;  %p2099_p13 = scmp.lt.u32.totalorder %s2090_s26, %s2415_s20 }
  0xaa   : > { %p2094_p1 = pneg %p2093_p10 }
  0xab   : > { %p2098_p11 = por %p2097_p6, %p2096_p4 }
  0xad   : > { %p2100_p3 = por %p2099_p13, %p2098_p11 }
  0xaf   : > { %p2101_p7 = pnand %p2100_p3, %p2094_p1 }
  0xb1   : > { %2104 = shalt.err (!%p2101_p7)
}
  0xb2   : > { %s2105_s19 = scalar_lea.vmem %s2473_s1, 512  ;;  %s2207_s30 = smov [#allocation7]  }
  0xb3   : > { %p2106_p12 = scmp.ne.s32.totalorder %s2473_s1, %s2105_s19  ;;  %s2110_s14 = sshll.u32 %s2207_s30, 4  ;;  %s2111_s14 = int_to_ptr.vmem [resolvable:$false] %s2110_s14 }
  0xb4   : > { %s2112_s17 = scalar_lea.vmem %s2111_s14, 1024  ;;  %p2113_p9 = scmp.lt.s32.totalorder %s2473_s1, %s2111_s14 }
  0xb5   : > { %p2108_p2 = pnand %p2106_p12, %p2776_p8  ;;  %p2114_p10 = scmp.lt.s32.totalorder %s2112_s17, %s2105_s19 }
  0xb7   : > { %p2109_p5 = pneg %p2108_p2  ;;  %p2115_p4 = por %p2114_p10, %p2113_p9 }
  0xb9   : > { %p2116_p6 = pnand %p2115_p4, %p2109_p5 }
  0xbb   : > { %2119 = shalt.err (!%p2116_p6)
}
  0xbc   : > { %1894 = dma.hbm_to_vmem [thread:$0]  (!%p2777_p0), %s2415_s20, 512, %s2473_s1, %s2377_s23, %s2770_s16, %s2770_s16, %s2775_s5  }
  0xbd   : > { %p2778_p8 = scmp.ne.s32.totalorder %s2761_s15, 0 }
  0xbe   : > { %s2532_s22 = sand.u32 (!%p2778_p8), 1, %s2190_s25   ;;  %p2779_p1 = scmp.ne.s32.totalorder (!%p2778_p8), %s2756_s12, 0 }
  0xbf   : > { %341 = sbr.rel (%p2778_p8) target bundleno = 1126 (0x466), region = 48  ;;  %s1629_s3 = sshll.u32 (!%p2778_p8), %s2532_s22, 4 }
  0xc0   : > { %s344_s24 = scalar_lea.sflag (!%p2778_p8), [#allocation3], %s2532_s22  ;;  %s2536_s7 = scalar_lea.vmem (!%p2778_p8), [#allocation2], %s1629_s3 }
  0xc6   : > { %2165 = dma.done.wait (%p2779_p1), %s344_s24, 256  }
  0xc7   : > { %2167 = vsyncadd (%p2779_p1), %s344_s24, 4294967040  ;;  %s2780_s8 = sld [smem:[#allocation21_spill]]  ;;  %s2544_s15 = sshll.u32 %s2532_s22, 5 }
  0xc8   : > { %s356_s16 = scalar_lea.vmem [#allocation5], %s2544_s15 }
  0xcd   : > { %s352_s1 = sand.u32 1, %s2780_s8  }
  0xce   : > { %s353_s23 = scalar_lea.sflag [#allocation6], %s352_s1 }
  0xcf   : > { %2169 = dma.done.wait (%p2779_p1), %s353_s23, 1024  }
  0xd0   : > { %2171 = vsyncadd (%p2779_p1), %s353_s23, 4294966272  ;;  %s2552_s20 = scalar_lea.vmem [#allocation7], %s2544_s15  ;;  %p2781_p0 = scmp.eq.s32.totalorder %s2780_s8, 0 }
  0xd2   : > { %2173 = dma.done.wait (%p2781_p0), [#allocation9], 512   ;;  %p2782_p11 = pmov %p2781_p0 }
  0xd3   : > { %p2783_p13 = pmov %p2781_p0 }
  0xd4   : > { %2175 = vsyncadd (%p2782_p11), [#allocation9], 4294966784 }
  0xd5   : > { %2177 = dma.done.wait (%p2783_p13), [#allocation12], 256   ;;  %p2784_p3 = pmov %p2781_p0 }
  0xd6   : > { %vm431_vm0 = vcmask 130048   ;;  %v426_v0 = vld [vmem:[%s356_s16] sm:$0xff]  ;;  %v427_v1 = vld [vmem:[%s356_s16 + $0x8] sm:$0xff]  ;;  %v1636_v2 = vld [vmem:[%s356_s16 + $0x10] sm:$0xff]  ;;  %s2785_s9 = sld [smem:[#allocation28_spill]]  ;;  %s417_s26 = scalar_lea.vmem [#allocation13], %s2544_s15 }
  0xd7   : > { %2179 = vsyncadd (%p2784_p3), [#allocation12], 4294967040  ;;  %v1807_v3 = vpack.c.bf16 %v427_v1, %v426_v0  ;;  %v1637_v4 = vld [vmem:[%s356_s16 + $0x18] sm:$0xff]  ;;  %v596_v5 = vadd.f32 %v1636_v2, %v426_v0  ;;  %v2562_v6 = vld [vmem:[#allocation8] sm:$0xff]  ;;  %s1468_s18 = sshll.u32 %s417_s26, 4  ;;  %s2786_s13 = sld [smem:[#allocation24_spill]]  ;;  %s2657_s18 = int_to_ptr.vmem [resolvable:$true] %s1468_s18 }
  0xd8   : > { %v2564_v7 = vld [vmem:[#allocation10] sm:$0xff]  ;;  %v1811_v8 = vpack.c.bf16 %v1637_v4, %v1636_v2  ;;  %v597_v9 = vadd.f32 %v1637_v4, %v427_v1  ;;  %1727 = vmatprep.mubr.msk.f32.mxu0 %vm431_vm0, %v2562_v6  ;;  %v2570_v10 = vld [vmem:[#allocation8 + $0x8] sm:$0xff]  ;;  %v2572_v12 = vld [vmem:[#allocation10 + $0x8] sm:$0xff]  ;;  %s1674_s29 = sshll.u32 %s2780_s8, 9  ;;  %s2787_s19 = sld [smem:[#allocation29_spill]] }
  0xd9   : > { %1734 = vmatprep.mubr.msk.f32.mxu1 %vm431_vm0, %v2564_v7  ;;  %1808 = vmatprep.subr.bf16.mxu0 %v1807_v3  ;;  %v594_v13 = vadd.f32 %v2564_v7, %v2562_v6  ;;  %v595_v14 = vadd.f32 %v2572_v12, %v2570_v10  ;;  %v2600_v18 = vld [vmem:[#allocation11] sm:$0xff]  ;;  %v2602_v19 = vld [vmem:[#allocation11 + $0x8] sm:$0xff]  ;;  %v1651_v60 = vld [vmem:[%s2552_s20 + $0x18] sm:$0xff]  ;;  %v1105_v4 = vsub.f32 %v2562_v6, %v2564_v7  ;;  %s1455_s14 = scalar_lea.sflag [#allocation4], %s2532_s22  ;;  %s2120_s17 = scalar_lea.vmem %s2657_s18, 512 }
  0xda   : > { %1812 = vmatprep.subr.bf16.mxu1 %v1811_v8  ;;  %1810 = vmatpush3.bf16.msra.mxu0 %v1807_v3  ;;  %v1815_v11 = vpack.c.bf16 %v597_v9, %v596_v5  ;;  %v2606_v20 = vpack.c.bf16 %v2602_v19, %v2600_v18  ;;  %v939_v40 = vld [vmem:[%s2536_s7 + $0x8] sm:$0xff]  ;;  %v938_v41 = vld [vmem:[%s2536_s7] sm:$0xff]  ;;  %p2121_p7 = scmp.ne.s32.totalorder %s2657_s18, %s2120_s17  ;;  %s2208_s3 = smov [#allocation13]  }
  0xdb   : > { %1814 = vmatpush3.bf16.msra.mxu1 %v1811_v8  ;;  %v941_v42 = vsub.f32 1.0, %v939_v40  ;;  %v940_v44 = vsub.f32 1.0, %v938_v41  ;;  %v945_v47 = vld [vmem:[%s2552_s20 + $0x8] sm:$0xff]  ;;  %v944_v51 = vld [vmem:[%s2552_s20] sm:$0xff]  ;;  %v1650_v62 = vld [vmem:[%s2552_s20 + $0x10] sm:$0xff]  ;;  %s2124_s24 = sshll.u32 %s2208_s3, 4  ;;  %s2125_s24 = int_to_ptr.vmem [resolvable:$false] %s2124_s24 }
  0xdc   : > { %1816 = vmatprep.subr.bf16.mxu0 %v1815_v11  ;;  %v2587_v15 = vld [vmem:[%s2785_s9] sm:$0xff]  ;;  %v2592_v16 = vld [vmem:[%s2785_s9 + $0x8] sm:$0xff]  ;;  %s2126_s7 = scalar_lea.vmem %s2125_s24, 1024  ;;  %p2127_p9 = scmp.lt.s32.totalorder %s2657_s18, %s2125_s24 }
  0xdd   : > { %1728 = vmatmul.mubr.msk.f32.vlgmr.msra.gmra.mrb[0].mxu0 %vm431_vm0, %v2570_v10  ;;  %v2596_v17 = vpack.c.bf16 %v2592_v16, %v2587_v15  ;;  %v849_v21 = vadd.f32 %v2600_v18, %v2587_v15  ;;  %v850_v22 = vadd.f32 %v2602_v19, %v2592_v16  ;;  %p2788_p12 = scmp.ne.s32.totalorder %s2786_s13, 0  ;;  %p2128_p10 = scmp.lt.s32.totalorder %s2126_s7, %s2120_s17 }
  0xde   : > { %1735 = vmatmul.mubr.msk.f32.vlgmr.msra.gmra.mrb[0].mxu1 %vm431_vm0, %v2572_v12  ;;  %1818 = vmatpush3.bf16.msra.mxu0 %v1815_v11  ;;  %v1106_v11 = vsub.f32 %v2570_v10, %v2572_v12  ;;  %s2663_s30 = scalar_lea.hbm %s2787_s19, %s1674_s29 }
  0xdf   : > { %1741 = vmatprep.mubr.msk.f32.mxu0 %vm431_vm0, %v594_v13  ;;  %1820 = vmatprep.subr.bf16.mxu1 %v2596_v17  ;;  %v1827_v23 = vpack.c.bf16 %v850_v22, %v849_v21  ;;  %p2122_p2 = pnand %p2121_p7, %p2788_p12  ;;  %p2129_p4 = por %p2128_p10, %p2127_p9 }
  0xe0   : > { %1822 = vmatpush3.bf16.msra.mxu1 %v2596_v17  ;;  %1824 = vmatprep.subr.bf16.mxu0 %v2606_v20 }
  0xe1   : > { %1742 = vmatmul.mubr.msk.f32.vlgmr.msra.gmra.mrb[2].mxu0 %vm431_vm0, %v595_v14  ;;  %1828 = vmatprep.subr.bf16.mxu1 %v1827_v23  ;;  %p2123_p5 = pneg %p2122_p2 }
  0xe2   : > { %1826 = vmatpush3.bf16.msra.mxu0 %v2606_v20 }
  0xe3   : > { %p2130_p6 = pnand %p2129_p4, %p2123_p5 }
 0x1b0   : > { %v1729_v24 = vpop.f32.mrb[0].mxu0 }
 0x1b1   : > { %v1736_v25 = vpop.f32.mrb[0].mxu1  ;;  %v504_v26 = vpop.f32.mrb[1].mxu0 }
 0x1b2   : > { %v680_v27 = vsub.f32 %v1729_v24, %v1736_v25  ;;  %v585_v28 = vpop.f32.mrb[1].mxu1 }
 0x1b3   : > { %v679_v29 = vsub.f32 %v504_v26, %v585_v28 }
 0x1b4   : > { %v1743_v30 = vpop.f32.mrb[2].mxu0 }
 0x1b5   : > { %v682_v31 = vsub.f32 %v1743_v30, %v1729_v24  ;;  %1748 = vmatprep.mubr.msk.f32.mxu1 %vm431_vm0, %v679_v29  ;;  %v670_v32 = vpop.f32.mrb[3].mxu0 }
 0x1b6   : > { %v681_v33 = vsub.f32 %v670_v32, %v504_v26  ;;  %1749 = vmatmul.mubr.msk.f32.vlgmr.msra.gmra.mrb[2].mxu1 %vm431_vm0, %v680_v27 }
 0x1b7   : > { %v684_v34 = vsub.f32 %v682_v31, %v1736_v25  ;;  %1830 = vmatpush3.bf16.msra.mxu1 %v1827_v23 }
 0x1b8   : > { %v683_v35 = vsub.f32 %v681_v33, %v585_v28 }
 0x1b9   : > { %v848_v36 = vadd.f32 %v684_v34, %v680_v27 }
 0x1ba   : > { %v847_v37 = vadd.f32 %v683_v35, %v679_v29  ;;  %1755 = vmatprep.mubr.msk.f32.mxu0 %vm431_vm0, %v683_v35 }
 0x1bb   : > { %1756 = vmatmul.mubr.msk.f32.vlgmr.msra.gmra.mrb[4].mxu0 %vm431_vm0, %v684_v34 }
 0x1bc   : > { %1762 = vmatprep.mubr.msk.f32.mxu1 %vm431_vm0, %v847_v37  ;;  %1769 = vmatprep.mubr.msk.f32.mxu0 %vm431_vm0, %v2562_v6  ;;  %v1360_v6 = vsub.f32 %v2587_v15, %v2600_v18 }
 0x1bd   : > { %1763 = vmatmul.mubr.msk.f32.vlgmr.msra.gmra.mrb[4].mxu1 %vm431_vm0, %v848_v36 }
 0x1be   : > { %1776 = vmatprep.mubr.msk.f32.mxu1 %vm431_vm0, %v2564_v7  ;;  %v1361_v7 = vsub.f32 %v2592_v16, %v2602_v19 }
 0x289   : > { %v1750_v38 = vpop.f32.mrb[2].mxu1 }
 0x28a   : > { %v757_v39 = vpop.f32.mrb[3].mxu1 }
 0x28e   : > { %v1757_v43 = vpop.f32.mrb[4].mxu0 }
 0x28f   : > { %v933_v45 = vsub.f32 %v1750_v38, %v1757_v43  ;;  %v838_v46 = vpop.f32.mrb[5].mxu0 }
 0x290   : > { %v932_v48 = vsub.f32 %v757_v39, %v838_v46  ;;  %v1764_v49 = vpop.f32.mrb[4].mxu1 }
 0x291   : > { %v943_v50 = vmul.f32 %v941_v42, %v933_v45  ;;  %v935_v52 = vsub.f32 %v1764_v49, %v1750_v38  ;;  %v923_v53 = vpop.f32.mrb[5].mxu1 }
 0x292   : > { %v942_v54 = vmul.f32 %v940_v44, %v932_v48  ;;  %v934_v55 = vsub.f32 %v923_v53, %v757_v39 }
 0x293   : > { %v947_v56 = vadd.f32 %v945_v47, %v943_v50  ;;  %v937_v57 = vsub.f32 %v935_v52, %v1757_v43 }
 0x294   : > { %v946_v58 = vadd.f32 %v944_v51, %v942_v54  ;;  %v936_v59 = vsub.f32 %v934_v55, %v838_v46 }
 0x295   : > { %v949_v61 = vmul.f32 %v941_v42, %v937_v57 }
 0x296   : > { %v948_v63 = vmul.f32 %v940_v44, %v936_v59  ;;  %v1831_v0 = vpack.c.bf16 %v947_v56, %v946_v58 }
 0x297   : > { %v954_v1 = vadd.f32 %v1651_v60, %v949_v61 }
 0x298   : > { %1832 = vmatprep.subr.bf16.mxu0 %v1831_v0  ;;  %v953_v2 = vadd.f32 %v1650_v62, %v948_v63 }
 0x299   : > { %1834 = vmatpush3.bf16.msra.mxu0 %v1831_v0  ;;  %v1108_v3 = vadd.f32 %v954_v1, %v947_v56 }
 0x29a   : > { %v1835_v5 = vpack.c.bf16 %v954_v1, %v953_v2  ;;  %v1107_v8 = vadd.f32 %v953_v2, %v946_v58 }
 0x29c   : > { %1836 = vmatprep.subr.bf16.mxu1 %v1835_v5  ;;  %1770 = vmatmul.mubr.msk.f32.vlgmr.msra.gmra.mrb[6].mxu0 %vm431_vm0, %v2570_v10  ;;  %v1839_v9 = vpack.c.bf16 %v1108_v3, %v1107_v8  ;;  %v1851_v10 = vpack.c.bf16 %v1361_v7, %v1360_v6 }
 0x29d   : > { %1838 = vmatpush3.bf16.msra.mxu1 %v1835_v5  ;;  %1783 = vmatprep.mubr.msk.f32.mxu0 %vm431_vm0, %v1105_v4 }
 0x29e   : > { %1840 = vmatprep.subr.bf16.mxu0 %v1839_v9  ;;  %1844 = vmatprep.subr.bf16.mxu1 %v2596_v17 }
 0x29f   : > { %1842 = vmatpush3.bf16.msra.mxu0 %v1839_v9 }
 0x2a0   : > { %1777 = vmatmul.mubr.msk.f32.vlgmr.msra.gmra.mrb[6].mxu1 %vm431_vm0, %v2572_v12  ;;  %1848 = vmatprep.subr.bf16.mxu0 %v2606_v20 }
 0x2a1   : > { %1846 = vmatpush3.bf16.msra.mxu1 %v2596_v17 }
 0x2a2   : > { %1784 = vmatmul.mubr.msk.f32.vlgmr.msra.gmra.mrb[8].mxu0 %vm431_vm0, %v1106_v11  ;;  %1852 = vmatprep.subr.bf16.mxu1 %v1851_v10 }
 0x2a3   : > { %1850 = vmatpush3.bf16.msra.mxu0 %v2606_v20 }
 0x36f   : > { %v1771_v13 = vpop.f32.mrb[6].mxu0 }
 0x370   : > { %v1021_v14 = vpop.f32.mrb[7].mxu0 }
 0x373   : > { %v1778_v21 = vpop.f32.mrb[6].mxu1 }
 0x374   : > { %v1191_v12 = vadd.f32 %v1778_v21, %v1771_v13  ;;  %v1096_v22 = vpop.f32.mrb[7].mxu1 }
 0x375   : > { %v1190_v23 = vadd.f32 %v1096_v22, %v1021_v14  ;;  %v1785_v24 = vpop.f32.mrb[8].mxu0 }
 0x376   : > { %v1193_v17 = vsub.f32 %v1785_v24, %v1771_v13  ;;  %v1181_v25 = vpop.f32.mrb[9].mxu0 }
 0x377   : > { %v1192_v26 = vsub.f32 %v1181_v25, %v1021_v14  ;;  %1790 = vmatprep.mubr.msk.f32.mxu1 %vm431_vm0, %v1190_v23 }
 0x378   : > { %v1195_v20 = vadd.f32 %v1778_v21, %v1193_v17  ;;  %1791 = vmatmul.mubr.msk.f32.vlgmr.msra.gmra.mrb[8].mxu1 %vm431_vm0, %v1191_v12 }
 0x379   : > { %v1194_v15 = vadd.f32 %v1192_v26, %v1096_v22  ;;  %1854 = vmatpush3.bf16.msra.mxu1 %v1851_v10 }
 0x37a   : > { %v1359_v16 = vadd.f32 %v1195_v20, %v1191_v12 }
 0x37b   : > { %v1358_v18 = vadd.f32 %v1194_v15, %v1190_v23  ;;  %1797 = vmatprep.mubr.msk.f32.mxu0 %vm431_vm0, %v1194_v15 }
 0x37c   : > { %1798 = vmatmul.mubr.msk.f32.vlgmr.msra.gmra.mrb[10].mxu0 %vm431_vm0, %v1195_v20 }
 0x37d   : > { %1804 = vmatprep.mubr.msk.f32.mxu1 %vm431_vm0, %v1358_v18 }
 0x37e   : > { %1805 = vmatmul.mubr.msk.f32.vlgmr.msra.gmra.mrb[10].mxu1 %vm431_vm0, %v1359_v16 }
 0x44b   : > { %v1792_v19 = vpop.f32.mrb[8].mxu1 }
 0x44c   : > { %v1268_v27 = vpop.f32.mrb[9].mxu1 }
 0x44f   : > { %v1799_v28 = vpop.f32.mrb[10].mxu0 }
 0x450   : > { %v1444_v29 = vadd.f32 %v1799_v28, %v1792_v19  ;;  %v1349_v30 = vpop.f32.mrb[11].mxu0 }
 0x451   : > { %v1443_v31 = vadd.f32 %v1349_v30, %v1268_v27  ;;  %v1806_v32 = vpop.f32.mrb[10].mxu1 }
 0x452   : > { %1450 = vst.msk [vmem:[%s417_s26 + $0x8] sm:$0xff] %vm431_vm0, %v1444_v29  ;;  %v1446_v33 = vsub.f32 %v1806_v32, %v1792_v19  ;;  %v1434_v34 = vpop.f32.mrb[11].mxu1 }
 0x453   : > { %1449 = vst.msk [vmem:[%s417_s26] sm:$0xff] %vm431_vm0, %v1443_v31  ;;  %v1445_v35 = vsub.f32 %v1434_v34, %v1268_v27 }
 0x454   : > { %v1448_v36 = vadd.f32 %v1799_v28, %v1446_v33 }
 0x455   : > { %v1447_v37 = vadd.f32 %v1445_v35, %v1349_v30 }
 0x456   : > { %1665 = vst.msk [vmem:[%s417_s26 + $0x18] sm:$0xff] %vm431_vm0, %v1448_v36 }
 0x457   : > { %1664 = vst.msk [vmem:[%s417_s26 + $0x10] sm:$0xff] %vm431_vm0, %v1447_v37 }
 0x458   : > { %2133 = shalt.err (!%p2130_p6)
}
 0x459   : > { %s2134_s8 = scalar_lea.hbm %s2663_s30, 512  ;;  %s2138_s23 = scalar_lea.hbm %s2787_s19, 1024 }
 0x45a   : > { %p2135_p8 = scmp.ne.s32.totalorder %s2663_s30, %s2134_s8  ;;  %p2139_p11 = scmp.lt.u32.totalorder %s2663_s30, %s2787_s19 }
 0x45b   : > { %p2140_p13 = scmp.lt.u32.totalorder %s2138_s23, %s2134_s8  ;;  %p2142_p7 = scmp.lt.u32.totalorder %s2134_s8, %s2663_s30 }
 0x45c   : > { %p2136_p1 = pnand %p2135_p8, %p2788_p12 }
 0x45d   : > { %p2141_p3 = por %p2140_p13, %p2139_p11 }
 0x45e   : > { %p2137_p0 = pneg %p2136_p1 }
 0x45f   : > { %p2143_p2 = por %p2142_p7, %p2141_p3 }
 0x461   : > { %p2144_p5 = pnand %p2143_p2, %p2137_p0 }
 0x463   : > { %2147 = shalt.err (!%p2144_p5)
}
 0x464   : > { %s2209_s12 = smov 128   ;;  %s2210_s5 = smov 8  }
 0x465   : > { %1873 = dma.vmem_to_hbm [thread:$0]  (%p2788_p12), %s2657_s18, 512, %s2663_s30, %s1455_s14, %s2209_s12, %s2209_s12, %s2210_s5  }
 0x466 PF: > { %s2789_s28 = sld [smem:[#allocation19_spill]]  ;;  %s2790_s10 = sld [smem:[#allocation25_spill]] }
 0x467   : > { %p2792_p10 = scmp.ge.s32.totalorder %s2198_s27, 2 }
 0x46c   : > { %s1483_s26 = sand.u32 1, %s2789_s28   ;;  %p2791_p9 = scmp.ne.s32.totalorder %s2790_s10, 0 }
 0x46d   : > { %s1484_s29 = scalar_lea.sflag [#allocation4], %s1483_s26 }
 0x46e   : > { %p1896_p4 = pnand %p2792_p10, %p2791_p9 }
 0x470   : > { %2181 = dma.done.wait (!%p1896_p4), %s1484_s29, 512  }
 0x471   : > { %2183 = vsyncadd (!%p1896_p4), %s1484_s29, 4294966784  ;;  %s2793_s27 = sld [smem:[#allocation22_spill]]  ;;  %s2794_s11 = sld [smem:[#allocation20_spill]] }
 0x472   : > { %s2795_s26 = sld [smem:[#allocation23_spill]]  ;;  %s2796_s24 = smov %s2190_s25 }
 0x477   : > { %p25_p6 = scmp.ge.s32.totalorder %s2793_s27, 4   ;;  %s2797_s25 = smov %s2794_s11 }
 0x479   :  { %27 = sbr.rel (!%p25_p6) target bundleno = 14 (0xe), region = 132 }
 0x480   :  { %1489 = vsyncpa [#allocation3], 1 }
 0x481   :  { %1491 = vsyncpa [#allocation3 + $0x1], 1 }
 0x482   :  { %1492 = vsyncpa [#allocation6], 1 }
 0x483   :  { %1494 = vsyncpa [#allocation6 + $0x1], 1 }
 0x484   :  { %1495 = vsyncpa [#allocation9], 1 }
 0x485   :  { %1496 = vsyncpa [#allocation12], 1 }
 0x486   :  { %1497 = vsyncpa [#allocation4], 1 }
 0x487   :  { %1499 = vsyncpa [#allocation4 + $0x1], 1 }

</bundles_post_ra>
